<compile_context>
chip_gen: v6e
topology: v6e:2x2x1
jax: 0.10.0
libtpu: 0.0.40
codegen_flags: <defaults>
</compile_context>

<pallas_src>
import jax
import jax.numpy as jnp
from jax.experimental import pallas as pl
from jax.experimental.pallas import tpu as pltpu

LN_EPS = 1e-5                       # nn.LayerNorm default
VMEM_LIMIT = 48 * 1024 * 1024       # > v5e 16 MiB default, < v7x 64 MiB physical
TARGET_BLOCK_BYTES = 4 * 1024 * 1024


def _auto_tile_rows(rows, dim, dtype, target_bytes=TARGET_BLOCK_BYTES,
                    max_rows=4096):
    """Pick a row tile giving ~target_bytes blocks, sublane-pack aligned."""
    itemsize = jnp.dtype(dtype).itemsize
    mult = max(8, 32 // itemsize)  # 8 (f32) / 16 (bf16) / 32 (int8, fp8)
    t = target_bytes // max(1, dim * itemsize)
    t = max(mult, (t // mult) * mult)
    t = min(t, max_rows)
    rows_padded = ((rows + mult - 1) // mult) * mult
    t = min(t, rows_padded)
    # Keep >= ~4 grid steps when possible so v7x megacore can shard rows.
    if rows_padded // t < 4 and rows_padded >= 4 * mult:
        t = max(mult, ((rows_padded // 4) // mult) * mult)
    return t


def _layernorm_f32(x, gb):
    """LayerNorm in f32: x (tile_rows, dim), gb (2, dim) = [gamma; beta]."""
    mean = jnp.mean(x, axis=-1, keepdims=True)
    centered = x - mean
    var = jnp.mean(centered * centered, axis=-1, keepdims=True)
    inv = jax.lax.rsqrt(var + LN_EPS)
    return centered * inv * gb[0:1, :] + gb[1:2, :]


# ---------------------------------------------------------------------------
# Standalone LayerNorm kernel (generic-`fn` path)
# ---------------------------------------------------------------------------
def _layernorm_kernel(x_ref, gb_ref, o_ref):
    x = x_ref[...].astype(jnp.float32)
    y = _layernorm_f32(x, gb_ref[...])
    o_ref[...] = y.astype(o_ref.dtype)


def layernorm_pallas(x2d, gamma, beta, *, tile_rows=None):
    """LayerNorm over the last dim of a (rows, dim) array via Pallas."""
    rows, dim = x2d.shape
    if tile_rows is None:
        tile_rows = _auto_tile_rows(rows, dim, x2d.dtype)
    gb = jnp.stack([gamma, beta], axis=0).astype(jnp.float32)  # (2, dim)

    grid = (pl.cdiv(rows, tile_rows),)
    return pl.pallas_call(
        _layernorm_kernel,
        out_shape=jax.ShapeDtypeStruct((rows, dim), x2d.dtype),
        grid_spec=pltpu.PrefetchScalarGridSpec(
            num_scalar_prefetch=0,
            grid=grid,
            in_specs=[
                pl.BlockSpec((tile_rows, dim), lambda i: (i, 0)),
                pl.BlockSpec((2, dim), lambda i: (0, 0)),
            ],
            out_specs=pl.BlockSpec((tile_rows, dim), lambda i: (i, 0)),
        ),
        compiler_params=pltpu.CompilerParams(
            dimension_semantics=("parallel",),
            vmem_limit_bytes=VMEM_LIMIT,
        ),
    )(x2d, gb)


# ---------------------------------------------------------------------------
# Fused PreNorm + Linear kernel: out = LayerNorm(x) @ W + b
# ---------------------------------------------------------------------------
def _prenorm_linear_kernel(x_ref, gb_ref, w_ref, b_ref, o_ref, normed_ref):
    # grid = (row tiles i [parallel], hidden tiles j [arbitrary]).
    # The x tile is resident across j; normalize once (j == 0) into VMEM
    # scratch and reuse that for every hidden tile.
    @pl.when(pl.program_id(1) == 0)
    def _():
        x = x_ref[...].astype(jnp.float32)
        y = _layernorm_f32(x, gb_ref[...])
        normed_ref[...] = y.astype(normed_ref.dtype)

    acc = jnp.dot(normed_ref[...], w_ref[...],
                  preferred_element_type=jnp.float32)
    acc = acc + b_ref[...].astype(jnp.float32)
    o_ref[...] = acc.astype(o_ref.dtype)


def prenorm_linear_pallas(x2d, gamma, beta, w, bias, *,
                          tile_rows=None, tile_n=None):
    rows, dim = x2d.shape
    dim_w, hidden = w.shape
    assert dim_w == dim
    if tile_rows is None:
        tile_rows = _auto_tile_rows(rows, dim, x2d.dtype)
    if tile_n is None:
        tile_n = hidden if hidden <= 512 else 512

    gb = jnp.stack([gamma, beta], axis=0).astype(jnp.float32)  # (2, dim)
    bias2d = bias.reshape(1, hidden)
    out_dtype = jnp.result_type(x2d.dtype, w.dtype)
    # Matmul LHS (normalized x) is kept in the LHS input dtype; RHS stays in
    # w's dtype — MXU handles mixed f32/bf16 inputs with f32 accumulation.
    normed_dtype = x2d.dtype

    grid = (pl.cdiv(rows, tile_rows), pl.cdiv(hidden, tile_n))
    return pl.pallas_call(
        _prenorm_linear_kernel,
        out_shape=jax.ShapeDtypeStruct((rows, hidden), out_dtype),
        grid_spec=pltpu.PrefetchScalarGridSpec(
            num_scalar_prefetch=0,
            grid=grid,
            in_specs=[
                pl.BlockSpec((tile_rows, dim), lambda i, j: (i, 0)),
                pl.BlockSpec((2, dim), lambda i, j: (0, 0)),
                pl.BlockSpec((dim, tile_n), lambda i, j: (0, j)),
                pl.BlockSpec((1, tile_n), lambda i, j: (0, j)),
            ],
            out_specs=pl.BlockSpec((tile_rows, tile_n), lambda i, j: (i, j)),
            scratch_shapes=[pltpu.VMEM((tile_rows, dim), normed_dtype)],
        ),
        compiler_params=pltpu.CompilerParams(
            dimension_semantics=("parallel", "arbitrary"),
            vmem_limit_bytes=VMEM_LIMIT,
        ),
    )(x2d, gb, w, bias2d)


# ---------------------------------------------------------------------------
# Module wrappers
# ---------------------------------------------------------------------------
class Linear:
    """Simple y @ W + b, recognized by PreNorm for kernel fusion."""

    def __init__(self, weight, bias):
        self.weight = weight    # (dim, hidden)
        self.bias = bias        # (hidden,)

    def __call__(self, x):
        return x @ self.weight + self.bias


class PreNorm:
    """JAX/Pallas equivalent of the PyTorch PreNorm module."""

    def __init__(self, dim, fn):
        self.dim = dim
        self.fn = fn
        # nn.LayerNorm default init: weight = 1, bias = 0
        self.gamma = jnp.ones((dim,), jnp.float32)
        self.beta = jnp.zeros((dim,), jnp.float32)

    def __call__(self, x, **kwargs):
        orig_shape = x.shape
        assert orig_shape[-1] == self.dim
        x2d = x.reshape(-1, self.dim)

        # Fused path: fn is a known Linear and no extra kwargs.
        if not kwargs and isinstance(self.fn, Linear):
            hidden = self.fn.weight.shape[1]
            out2d = prenorm_linear_pallas(
                x2d, self.gamma, self.beta, self.fn.weight, self.fn.bias)
            return out2d.reshape(orig_shape[:-1] + (hidden,))

        # Generic path: LayerNorm kernel, then arbitrary fn in plain JAX.
        normed = layernorm_pallas(x2d, self.gamma, self.beta)
        normed = normed.reshape(orig_shape)
        return self.fn(normed, **kwargs)


if __name__ == "__main__":
    key = jax.random.PRNGKey(0)
    k_x, k_w, k_b = jax.random.split(key, 3)

    batch, seq, dim, hidden = 2, 8, 128, 128
    x = jax.random.normal(k_x, (batch, seq, dim), jnp.float32)
    W = jax.random.normal(k_w, (dim, hidden), jnp.float32) * 0.02
    b = jax.random.normal(k_b, (hidden,), jnp.float32) * 0.02

    def ref_layernorm(x, gamma, beta):
        mean = jnp.mean(x, axis=-1, keepdims=True)
        var = jnp.mean((x - mean) ** 2, axis=-1, keepdims=True)
        return (x - mean) * jax.lax.rsqrt(var + LN_EPS) * gamma + beta

    # ---- Path 1: fused PreNorm + Linear -----------------------------------
    model_lin = PreNorm(dim, Linear(W, b))
    out_lin = jax.block_until_ready(model_lin(x))
    ref_lin = ref_layernorm(x, model_lin.gamma, model_lin.beta) @ W + b
    assert out_lin.shape == (batch, seq, hidden)
    assert jnp.max(jnp.abs(out_lin - ref_lin)) < 1e-3, "fused path mismatch"

    # ---- Path 2: generic fn (LayerNorm kernel + plain-JAX fn) --------------
    model_gen = PreNorm(dim, jax.nn.gelu)
    out_gen = jax.block_until_ready(model_gen(x))
    ref_gen = jax.nn.gelu(ref_layernorm(x, model_gen.gamma, model_gen.beta))
    assert out_gen.shape == (batch, seq, dim)
    assert jnp.max(jnp.abs(out_gen - ref_gen)) < 1e-4, "generic path mismatch"

    print("KERNEL_OK")
</pallas_src>

<mosaic_0001>
module attributes {stable_mosaic.version = 11 : i64} {
  func.func @_prenorm_linear_kernel(%arg0: i32, %arg1: i32, %arg2: memref<16x128xf32, #tpu.memory_space<vmem>>, %arg3: memref<2x128xf32, #tpu.memory_space<vmem>>, %arg4: memref<128x128xf32, #tpu.memory_space<vmem>>, %arg5: memref<1x128xf32, #tpu.memory_space<vmem>>, %arg6: memref<16x128xf32, #tpu.memory_space<vmem>>, %arg7: memref<16x128xf32, #tpu.memory_space<vmem>>) attributes {dimension_semantics = [#tpu.dimension_semantics<parallel>, #tpu.dimension_semantics<arbitrary>], iteration_bounds = array<i64: 1, 1>, scalar_prefetch = 0 : i64, scratch_operands = 1 : i64, tpu.core_type = #tpu.core_type<tc>, window_params = [{transform_indices = @transform_0, window_bounds = array<i64: 16, 128>}, {pipeline_mode = #tpu.pipeline_mode<synchronous>, transform_indices = @transform_1, window_bounds = array<i64: 2, 128>}, {transform_indices = @transform_2, window_bounds = array<i64: 128, 128>}, {transform_indices = @transform_3, window_bounds = array<i64: 1, 128>}, {transform_indices = @transform_4, window_bounds = array<i64: 16, 128>}]} {
    %c0_i32 = arith.constant 0 : i32
    %0 = arith.cmpi eq, %arg1, %c0_i32 : i32
    %1 = arith.extui %0 : i1 to i32
    %c0_i32_0 = arith.constant 0 : i32
    %2 = arith.cmpi ne, %1, %c0_i32_0 : i32
    scf.if %2 {
      %c0_8 = arith.constant 0 : index
      %c0_9 = arith.constant 0 : index
      %10 = vector.load %arg2[%c0_8, %c0_9] : memref<16x128xf32, #tpu.memory_space<vmem>>, vector<16x128xf32>
      %c0_10 = arith.constant 0 : index
      %c0_11 = arith.constant 0 : index
      %11 = vector.load %arg3[%c0_10, %c0_11] : memref<2x128xf32, #tpu.memory_space<vmem>>, vector<2x128xf32>
      %cst_12 = arith.constant dense<0.000000e+00> : vector<16xf32>
      %12 = vector.multi_reduction <add>, %10, %cst_12 [1] : vector<16x128xf32> to vector<16xf32>
      %13 = vector.shape_cast %12 : vector<16xf32> to vector<16x1xf32>
      %cst_13 = arith.constant 1.280000e+02 : f32
      %14 = vector.broadcast %cst_13 : f32 to vector<16x1xf32>
      %15 = arith.divf %13, %14 : vector<16x1xf32>
      %16 = vector.broadcast %15 : vector<16x1xf32> to vector<16x128xf32>
      %17 = arith.subf %10, %16 : vector<16x128xf32>
      %18 = arith.mulf %17, %17 : vector<16x128xf32>
      %cst_14 = arith.constant dense<0.000000e+00> : vector<16xf32>
      %19 = vector.multi_reduction <add>, %18, %cst_14 [1] : vector<16x128xf32> to vector<16xf32>
      %20 = vector.shape_cast %19 : vector<16xf32> to vector<16x1xf32>
      %cst_15 = arith.constant 1.280000e+02 : f32
      %21 = vector.broadcast %cst_15 : f32 to vector<16x1xf32>
      %22 = arith.divf %20, %21 : vector<16x1xf32>
      %cst_16 = arith.constant 9.99999974E-6 : f32
      %23 = vector.broadcast %cst_16 : f32 to vector<16x1xf32>
      %24 = arith.addf %22, %23 : vector<16x1xf32>
      %25 = math.rsqrt %24 : vector<16x1xf32>
      %26 = vector.broadcast %25 : vector<16x1xf32> to vector<16x128xf32>
      %27 = arith.mulf %17, %26 : vector<16x128xf32>
      %28 = vector.extract_strided_slice %11 {offsets = [0, 0], sizes = [1, 128], strides = [1, 1]} : vector<2x128xf32> to vector<1x128xf32>
      %29 = vector.broadcast %28 : vector<1x128xf32> to vector<16x128xf32>
      %30 = arith.mulf %27, %29 : vector<16x128xf32>
      %31 = vector.extract_strided_slice %11 {offsets = [1, 0], sizes = [1, 128], strides = [1, 1]} : vector<2x128xf32> to vector<1x128xf32>
      %32 = vector.broadcast %31 : vector<1x128xf32> to vector<16x128xf32>
      %33 = arith.addf %30, %32 : vector<16x128xf32>
      %c0_17 = arith.constant 0 : index
      %c0_18 = arith.constant 0 : index
      %34 = vector.load %arg7[%c0_17, %c0_18] : memref<16x128xf32, #tpu.memory_space<vmem>>, vector<16x128xf32>
      tpu.vector_store %arg7[%c0_17, %c0_18], %33 {strides = array<i32>} : memref<16x128xf32, #tpu.memory_space<vmem>>, vector<16x128xf32>,
    } else {
    }
    %c0 = arith.constant 0 : index
    %c0_1 = arith.constant 0 : index
    %3 = vector.load %arg7[%c0, %c0_1] : memref<16x128xf32, #tpu.memory_space<vmem>>, vector<16x128xf32>
    %c0_2 = arith.constant 0 : index
    %c0_3 = arith.constant 0 : index
    %4 = vector.load %arg4[%c0_2, %c0_3] : memref<128x128xf32, #tpu.memory_space<vmem>>, vector<128x128xf32>
    %cst = arith.constant dense<0.000000e+00> : vector<16x128xf32>
    %5 = tpu.matmul %3, %4, %cst {dimension_numbers = #tpu.dot_dimension_numbers<[1], [0], [0], [1], [0, 0, 1, 1], [], []>} : vector<16x128xf32>, vector<128x128xf32>, vector<16x128xf32> -> vector<16x128xf32>
    %c0_4 = arith.constant 0 : index
    %c0_5 = arith.constant 0 : index
    %6 = vector.load %arg5[%c0_4, %c0_5] : memref<1x128xf32, #tpu.memory_space<vmem>>, vector<1x128xf32>
    %7 = vector.broadcast %6 : vector<1x128xf32> to vector<16x128xf32>
    %8 = arith.addf %5, %7 : vector<16x128xf32>
    %c0_6 = arith.constant 0 : index
    %c0_7 = arith.constant 0 : index
    %9 = vector.load %arg6[%c0_6, %c0_7] : memref<16x128xf32, #tpu.memory_space<vmem>>, vector<16x128xf32>
    tpu.vector_store %arg6[%c0_6, %c0_7], %8 {strides = array<i32>} : memref<16x128xf32, #tpu.memory_space<vmem>>, vector<16x128xf32>,
    return
  }
  func.func @transform_0(%arg0: i32, %arg1: i32) -> (i32, i32) {
    %c0_i32 = arith.constant 0 : i32
    %c0_i32_0 = arith.constant 0 : i32
    return %arg0, %c0_i32 : i32, i32
  }
  func.func @transform_1(%arg0: i32, %arg1: i32) -> (i32, i32) {
    %c0_i32 = arith.constant 0 : i32
    %c0_i32_0 = arith.constant 0 : i32
    %c0_i32_1 = arith.constant 0 : i32
    return %c0_i32, %c0_i32_0 : i32, i32
  }
  func.func @transform_2(%arg0: i32, %arg1: i32) -> (i32, i32) {
    %c0_i32 = arith.constant 0 : i32
    %c0_i32_0 = arith.constant 0 : i32
    return %c0_i32, %arg1 : i32, i32
  }
  func.func @transform_3(%arg0: i32, %arg1: i32) -> (i32, i32) {
    %c0_i32 = arith.constant 0 : i32
    %c0_i32_0 = arith.constant 0 : i32
    return %c0_i32, %arg1 : i32, i32
  }
  func.func @transform_4(%arg0: i32, %arg1: i32) -> (i32, i32) {
    %c0_i32 = arith.constant 0 : i32
    return %arg0, %arg1 : i32, i32
  }
}

</mosaic_0001>

<bundles_post_ra>
// kernel: tpu_custom_call.1
= control target key start
LH: loop header
LB: loop body
LE: loop exit
PB: predicated region body
PF: predicated region fallthrough
CT: control target
= control target key end

     0   :  { %9 = vsyncpa [#allocation4], 0  ;;  %s436_s0 = inlined_call_operand.hbm [shape: f32[16,128], index: 0, kind: input, shape index: {}]   ;;  %s437_s1 = inlined_call_operand.hbm [shape: f32[2,128], index: 1, kind: input, shape index: {}]   ;;  %s438_s2 = inlined_call_operand.hbm [shape: f32[128,128], index: 2, kind: input, shape index: {}]   ;;  %s439_s3 = inlined_call_operand.vmem [shape: f32[1,128], index: 3, kind: input, shape index: {}]   ;;  %s440_s4 = inlined_call_operand.hbm [shape: f32[16,128], index: 4, kind: output, shape index: {}]  }
   0x1   :  { %10 = vsyncpa [#allocation7], 0 }
   0x2   :  { %11 = vsyncpa [#allocation5], 0  ;;  %s371_s15 = smov [#allocation6]   ;;  %s372_s17 = smov [#allocation3]  }
   0x3   :  { %s30_s16 = sshll.u32 %s371_s15, 4  ;;  %s17_s18 = sshll.u32 %s372_s17, 4  ;;  %s31_s16 = int_to_ptr.vmem [resolvable:$true] %s30_s16  ;;  %s18_s18 = int_to_ptr.vmem [resolvable:$true] %s17_s18 }
   0x4   :  { %s293_s19 = scalar_lea.vmem %s31_s16, 32  ;;  %p298_p1 = scmp.lt.s32.totalorder %s31_s16, %s31_s16 }
   0x5   :  { %p294_p0 = scmp.ne.s32.totalorder %s31_s16, %s293_s19  ;;  %p299_p2 = scmp.lt.s32.totalorder %s293_s19, %s293_s19 }
   0x7   :  { %p300_p3 = por %p299_p2, %p298_p1 }
   0x9   :  { %p301_p4 = pnand %p300_p3, %p294_p0 }
   0xb   :  { %304 = shalt.err (!%p301_p4)
}
   0xc   :  { %33 = dma.hbm_to_vmem [thread:$0]  %s437_s1, 32, %s31_s16, [#allocation7]  }
   0xd   :  { %s313_s22 = scalar_lea.vmem %s18_s18, 256  ;;  %p318_p6 = scmp.lt.s32.totalorder %s18_s18, %s18_s18 }
   0xe   :  { %p314_p5 = scmp.ne.s32.totalorder %s18_s18, %s313_s22  ;;  %p319_p7 = scmp.lt.s32.totalorder %s313_s22, %s313_s22 }
  0x10   :  { %p320_p8 = por %p319_p7, %p318_p6 }
  0x12   :  { %p321_p9 = pnand %p320_p8, %p314_p5 }
  0x14   :  { %324 = shalt.err (!%p321_p9)
}
  0x15   :  { %s373_s23 = smov 128   ;;  %s374_s24 = smov 8  }
  0x16   :  { %23 = dma.hbm_to_vmem [thread:$0]  %s436_s0, 256, %s18_s18, [#allocation4], %s373_s23, %s373_s23, %s374_s24  }
  0x17   :  { %s375_s27 = smov [#allocation8]  }
  0x18   :  { %s39_s28 = sshll.u32 %s375_s27, 4  ;;  %s40_s28 = int_to_ptr.vmem [resolvable:$true] %s39_s28 }
  0x19   :  { %s333_s1 = scalar_lea.vmem %s40_s28, 2048  ;;  %p338_p11 = scmp.lt.s32.totalorder %s40_s28, %s40_s28 }
  0x1a   :  { %p334_p10 = scmp.ne.s32.totalorder %s40_s28, %s333_s1  ;;  %p339_p12 = scmp.lt.s32.totalorder %s333_s1, %s333_s1 }
  0x1c   :  { %p340_p13 = por %p339_p12, %p338_p11 }
  0x1e   :  { %p341_p0 = pnand %p340_p13, %p334_p10 }
  0x20   :  { %344 = shalt.err (!%p341_p0)
}
  0x21   :  { %45 = dma.hbm_to_vmem [thread:$0]  %s438_s2, 2048, %s40_s28, [#allocation7], %s373_s23, %s373_s23, %s374_s24  }
  0x22   :  { %365 = dma.done.wait [#allocation4], 256  }
  0x23   :  { %366 = vsyncadd [#allocation4], 4294967040 }
  0x24   :  { %367 = dma.done.wait [#allocation7], 2080  }
  0x25   :  { %368 = vsyncadd [#allocation7], 4294965216  ;;  %v61_v0 = vld [vmem:[#allocation3] sm:$0xff]  ;;  %v62_v1 = vld [vmem:[#allocation3 + $0x8] sm:$0xff]  ;;  %v87_v31 = vlaneseq  ;;  %s376_s5 = smov [#allocation9]  }
  0x26   :  { %64 = vadd.xlane.f32.xlu0 %v61_v0  ;;  %v118_v2 = vld [vmem:[#allocation8 + $0x78] sm:$0xff]  ;;  %v117_v3 = vld [vmem:[#allocation8 + $0x70] sm:$0xff]  ;;  %v116_v12 = vld [vmem:[#allocation8 + $0x68] sm:$0xff]  ;;  %s208_s6 = sshll.u32 %s376_s5, 4  ;;  %s209_s6 = int_to_ptr.vmem [resolvable:$true] %s208_s6 }
  0x27   :  { %240 = vmatprep.subr.mxu0 %v118_v2  ;;  %v115_v13 = vld [vmem:[#allocation8 + $0x60] sm:$0xff]  ;;  %v114_v14 = vld [vmem:[#allocation8 + $0x58] sm:$0xff]  ;;  %v113_v15 = vld [vmem:[#allocation8 + $0x50] sm:$0xff]  ;;  %v88_v33 = vshrl.u32 %v87_v31, 7  ;;  %s345_s7 = scalar_lea.vmem %s209_s6, 256  ;;  %p350_p2 = scmp.lt.s32.totalorder %s209_s6, %s209_s6 }
  0x28   :  { %241 = vmatpush3.msra.mxu0 %v118_v2  ;;  %v112_v16 = vld [vmem:[#allocation8 + $0x48] sm:$0xff]  ;;  %v111_v17 = vld [vmem:[#allocation8 + $0x40] sm:$0xff]  ;;  %v110_v18 = vld [vmem:[#allocation8 + $0x38] sm:$0xff]  ;;  %p346_p1 = scmp.ne.s32.totalorder %s209_s6, %s345_s7  ;;  %p351_p3 = scmp.lt.s32.totalorder %s345_s7, %s345_s7 }
  0x29   :  { %242 = vmatprep.subr.mxu0 %v117_v3  ;;  %v109_v19 = vld [vmem:[#allocation8 + $0x30] sm:$0xff]  ;;  %v108_v20 = vld [vmem:[#allocation8 + $0x28] sm:$0xff]  ;;  %v107_v21 = vld [vmem:[#allocation8 + $0x20] sm:$0xff]  ;;  %v89_v34 = vsub.s32 0, %v88_v33  ;;  %v95_v36 = vsub.s32 1, %v88_v33 }
  0x2a   :  { %66 = vadd.xlane.f32.xlu0 %v62_v1  ;;  %243 = vmatpush3.msra.mxu0 %v117_v3  ;;  %v106_v22 = vld [vmem:[#allocation8 + $0x18] sm:$0xff]  ;;  %v105_v23 = vld [vmem:[#allocation8 + $0x10] sm:$0xff]  ;;  %v104_v24 = vld [vmem:[#allocation8 + $0x8] sm:$0xff]  ;;  %p352_p4 = por %p351_p3, %p350_p2 }
  0x2b   :  { %244 = vmatprep.subr.mxu0 %v116_v12  ;;  %v103_v25 = vld [vmem:[#allocation8] sm:$0xff]  ;;  %v63_v35 = vld [vmem:[#allocation6] sm:$0x3]  ;;  %v221_v47 = vld [vmem:[%s439_s3] ss:$0 sm:$0xff] }
  0x2c   :  { %245 = vmatpush3.msra.mxu0 %v116_v12  ;;  %v90_v37 = vrot.slane %v63_v35, %v89_v34  ;;  %v96_v40 = vrot.slane %v63_v35, %v95_v36  ;;  %p353_p5 = pnand %p352_p4, %p346_p1 }
  0x2d   :  { %246 = vmatprep.subr.mxu0 %v115_v13 }
  0x2e   :  { %247 = vmatpush3.msra.mxu0 %v115_v13 }
  0x2f   :  { %248 = vmatprep.subr.mxu0 %v114_v14 }
  0x30   :  { %249 = vmatpush3.msra.mxu0 %v114_v14 }
  0x31   :  { %250 = vmatprep.subr.mxu0 %v113_v15 }
  0x32   :  { %251 = vmatpush3.msra.mxu0 %v113_v15 }
  0x33   :  { %252 = vmatprep.subr.mxu0 %v112_v16 }
  0x34   :  { %253 = vmatpush3.msra.mxu0 %v112_v16 }
  0x35   :  { %254 = vmatprep.subr.mxu0 %v111_v17 }
  0x36   :  { %255 = vmatpush3.msra.mxu0 %v111_v17 }
  0x37   :  { %256 = vmatprep.subr.mxu0 %v110_v18 }
  0x38   :  { %257 = vmatpush3.msra.mxu0 %v110_v18 }
  0x39   :  { %258 = vmatprep.subr.mxu0 %v109_v19 }
  0x3a   :  { %259 = vmatpush3.msra.mxu0 %v109_v19 }
  0x3b   :  { %260 = vmatprep.subr.mxu0 %v108_v20 }
  0x3c   :  { %261 = vmatpush3.msra.mxu0 %v108_v20 }
  0x3d   :  { %262 = vmatprep.subr.mxu0 %v107_v21 }
  0x3e   :  { %263 = vmatpush3.msra.mxu0 %v107_v21 }
  0x3f   :  { %264 = vmatprep.subr.mxu0 %v106_v22 }
  0x40   :  { %265 = vmatpush3.msra.mxu0 %v106_v22 }
  0x41   :  { %266 = vmatprep.subr.mxu0 %v105_v23 }
  0x42   :  { %267 = vmatpush3.msra.mxu0 %v105_v23 }
  0x43   :  { %268 = vmatprep.subr.mxu0 %v104_v24 }
  0x44   :  { %269 = vmatpush3.msra.mxu0 %v104_v24 }
  0x45   :  { %270 = vmatprep.subr.mxu0 %v103_v25 }
  0x46   :  { %271 = vmatpush3.msra.mxu0 %v103_v25 }
  0xaf   :  { %v65_v4 = vpop.xlane.xlu0 %64 }
  0xb0   :  { %v69_v5 = vmul.f32 0.0078125, %v65_v4 }
  0xb2   :  { %v417_v6 = vsub.f32 %v61_v0, %v69_v5 }
  0xb3   :  { %v67_v7 = vpop.xlane.xlu0 %66 }
  0xb4   :  { %v70_v8 = vmul.f32 0.0078125, %v67_v7  ;;  %v73_v9 = vmul.f32 %v417_v6, %v417_v6 }
  0xb6   :  { %v421_v10 = vsub.f32 %v62_v1, %v70_v8  ;;  %75 = vadd.xlane.f32.xlu1 %v73_v9 }
  0xb8   :  { %v74_v11 = vmul.f32 %v421_v10, %v421_v10 }
  0xba   :  { %77 = vadd.xlane.f32.xlu1 %v74_v11 }
 0x13f   :  { %v76_v26 = vpop.xlane.xlu1 %75 }
 0x140   :  { %v79_v27 = vmul.f32 0.0078125, %v76_v26 }
 0x142   :  { %v81_v28 = vadd.f32 1e-05, %v79_v27 }
 0x143   :  { %v78_v29 = vpop.xlane.xlu1 %77 }
 0x144   :  { %281 = vrsqrt.f32 %v81_v28  ;;  %v80_v30 = vmul.f32 0.0078125, %v78_v29 }
 0x146   :  { %v82_v32 = vadd.f32 1e-05, %v80_v30 }
 0x148   :  { %283 = vrsqrt.f32 %v82_v32 }
 0x151   :  { %v282_v38 = vpop.eup %281 }
 0x152   :  { %v85_v39 = vmul.f32 %v282_v38, %v417_v6 }
 0x154   :  { %v91_v41 = vmul.f32 %v90_v37, %v85_v39 }
 0x155   :  { %v284_v42 = vpop.eup %283 }
 0x156   :  { %v97_v43 = vadd.f32 %v96_v40, %v91_v41  ;;  %v86_v44 = vmul.f32 %v284_v42, %v421_v10 }
 0x158   :  { %272 = vmatprep.mubr.f32.mxu0 %v97_v43  ;;  %v92_v45 = vmul.f32 %v90_v37, %v86_v44 }
 0x15a   :  { %v98_v46 = vadd.f32 %v96_v40, %v92_v45 }
 0x15c   :  { %273 = vmatmul.mubr.f32.vlgmr.msra.gmra.mxu0 %v98_v46 }
 0x21c   :  { %v274_v48 = vpop.f32.mrf.mxu0 }
 0x21d   :  { %v198_v49 = vadd.f32 %v274_v48, %v221_v47 }
 0x21e   :  { %v192_v50 = vpop.f32.mrf.mxu0 }
 0x21f   :  { %202 = vst [vmem:[#allocation9 + $0x8] sm:$0xff] %v198_v49  ;;  %v193_v51 = vadd.f32 %v221_v47, %v192_v50 }
 0x221   :  { %201 = vst [vmem:[#allocation9] sm:$0xff] %v193_v51 }
 0x222   :  { %356 = shalt.err (!%p353_p5)
}
 0x223   :  { %214 = dma.vmem_to_hbm [thread:$0]  %s209_s6, 256, %s440_s4, [#allocation5], %s373_s23, %s373_s23, %s374_s24  }
 0x224   :  { %369 = dma.done.wait [#allocation5], 256  }
 0x225   :  { %370 = vsyncadd [#allocation5], 4294967040 }
 0x226   :  { %218 = vsyncpa [#allocation4], 1 }
 0x227   :  { %219 = vsyncpa [#allocation7], 1 }
 0x228   :  { %220 = vsyncpa [#allocation5], 1 }

</bundles_post_ra>
